<compile_context>
chip_gen: v5e
topology: v5e:2x2
jax: 0.10.0
libtpu: 0.0.40
codegen_flags: <defaults>
</compile_context>

<pallas_src>
import jax
import jax.numpy as jnp
from jax.experimental import pallas as pl
from jax.experimental.pallas import tpu as pltpu


def _mtl_kernel(x_ref, w0_ref, b0_ref, w1c_ref, b1c_ref, w2row_ref, b2row_ref,
                out_ref):
    # Shared layer: relu(x @ W0 + b0)  -> (tileB, H).  MXU, f32 accumulation.
    x = x_ref[...]
    s = jnp.dot(x.astype(w0_ref.dtype), w0_ref[...],
                preferred_element_type=jnp.float32)
    s = jnp.maximum(s + b0_ref[...], 0.0)

    # All task hidden layers fused: relu(s @ W1c + b1c) -> (tileB, T*H).
    h = jnp.dot(s.astype(w1c_ref.dtype), w1c_ref[...],
                preferred_element_type=jnp.float32)
    h = jnp.maximum(h + b1c_ref[...], 0.0)

    # Task heads on the VPU/XLU (free filler under the W1c matmul):
    #   out[b, t] = sum_h h[b, t*H + h] * w2[t, h] + b2[t]
    hw = h * w2row_ref[...]                       # (tileB, T*H) f32 elementwise
    tile_b = out_ref.shape[0]
    num_tasks = out_ref.shape[1]
    hidden = hw.shape[-1] // num_tasks
    col = jax.lax.broadcasted_iota(jnp.int32, (tile_b, num_tasks), 1)
    out = b2row_ref[...] + jnp.zeros((tile_b, num_tasks), jnp.float32)
    for t in range(num_tasks):                    # static unroll; T is tiny
        seg = hw[:, t * hidden:(t + 1) * hidden]
        st = jnp.sum(seg, axis=-1, keepdims=True)          # XLU reduce
        out = out + jnp.where(col == t, st, 0.0)            # VPU select
    out_ref[...] = out


def prepare_fused_params(params, weight_dtype=jnp.float32):
    """One-time (per weight update) fusion of per-task weights.

    For production sizes pass weight_dtype=jnp.bfloat16 (MXU operands only;
    biases stay f32 for the VPU).  Kept f32 by default so the 1e-5 check holds.
    """
    w1 = params["w1"]
    num_tasks, hidden, _ = w1.shape
    fused = {
        # W1c[:, t*H:(t+1)*H] = w1[t]                         -> (H, T*H)
        "w0": params["w0"].astype(weight_dtype),
        "b0": params["b0"].reshape(1, -1).astype(jnp.float32),
        "w1c": jnp.transpose(w1, (1, 0, 2)).reshape(hidden, num_tasks * hidden)
               .astype(weight_dtype),
        "b1c": params["b1"].reshape(1, num_tasks * hidden).astype(jnp.float32),
        # Per-task head weights as one dense row (no block-diag zeros).
        "w2row": params["w2"][:, :, 0].reshape(1, num_tasks * hidden)
                 .astype(jnp.float32),
        "b2row": params["b2"].reshape(1, num_tasks).astype(jnp.float32),
        # Unused in forward(); kept for parity with the PyTorch module.
        "log_sigma": params["log_sigma"],
        "num_tasks": num_tasks,
        "hidden": hidden,
    }
    return fused


def _vmem_budget_bytes(x, fused, tile_b):
    num_tasks, hidden = fused["num_tasks"], fused["hidden"]
    in_dim = x.shape[1]
    w_bytes = sum(int(fused[k].size) * fused[k].dtype.itemsize
                  for k in ("w0", "b0", "w1c", "b1c", "w2row", "b2row"))
    io_bytes = 2 * tile_b * (in_dim + num_tasks) * 4        # double-buffered x/out
    live_bytes = tile_b * hidden * 4 + 2 * tile_b * num_tasks * hidden * 4  # s,h,hw
    budget = int(1.5 * (w_bytes + io_bytes + live_bytes)) + (2 << 20)
    return max(16 << 20, min(budget, 64 << 20))              # v7x has 64 MiB VMEM


def separate_mtl_forward(x, fused, *, tile_b=None):
    """Returns the fused (B, num_tasks) output (lane-dense).  Use
    outputs_as_list() only if the PyTorch list-of-(B,1) form is needed."""
    batch, in_dim = x.shape
    num_tasks, hidden = fused["num_tasks"], fused["hidden"]
    if tile_b is None:
        tile_b = batch if batch <= 512 else 512               # multiple of 8 when tiled
    grid = (pl.cdiv(batch, tile_b),)

    resident = lambda a: pl.BlockSpec(a.shape, lambda i: (0, 0))  # fetched once
    cost = pl.CostEstimate(
        flops=2 * batch * (in_dim * hidden + hidden * num_tasks * hidden
                           + num_tasks * hidden),
        transcendentals=0,
        bytes_accessed=int(x.size * x.dtype.itemsize
                           + sum(int(fused[k].size) * fused[k].dtype.itemsize
                                 for k in ("w0", "b0", "w1c", "b1c", "w2row",
                                           "b2row"))
                           + batch * num_tasks * 4),
    )

    out = pl.pallas_call(
        _mtl_kernel,
        out_shape=jax.ShapeDtypeStruct((batch, num_tasks), jnp.float32),
        grid=grid,
        in_specs=[
            pl.BlockSpec((tile_b, in_dim), lambda i: (i, 0)),   # x: tiled over B
            resident(fused["w0"]),
            resident(fused["b0"]),
            resident(fused["w1c"]),
            resident(fused["b1c"]),
            resident(fused["w2row"]),
            resident(fused["b2row"]),
        ],
        out_specs=pl.BlockSpec((tile_b, num_tasks), lambda i: (i, 0)),
        compiler_params=pltpu.CompilerParams(
            dimension_semantics=("parallel",),                  # v7x: 2 TCs split B
            vmem_limit_bytes=_vmem_budget_bytes(x, fused, tile_b),
        ),
        cost_estimate=cost,
    )(x, fused["w0"], fused["b0"], fused["w1c"], fused["b1c"],
      fused["w2row"], fused["b2row"])
    return out


def outputs_as_list(out):
    """PyTorch-parity helper (list of (B,1) arrays).  Not on the hot path."""
    return [out[:, t:t + 1] for t in range(out.shape[1])]


def init_params(key, input_size, hidden_size, num_tasks=4):
    """Deterministic synthetic parameter init (shapes match the nn.Module)."""
    ks = jax.random.split(key, 6)
    scale_in = 1.0 / jnp.sqrt(jnp.float32(input_size))
    scale_h = 1.0 / jnp.sqrt(jnp.float32(hidden_size))
    return {
        "w0": jax.random.uniform(ks[0], (input_size, hidden_size), jnp.float32,
                                 -scale_in, scale_in),
        "b0": jax.random.uniform(ks[1], (1, hidden_size), jnp.float32,
                                 -scale_in, scale_in),
        "w1": jax.random.uniform(ks[2], (num_tasks, hidden_size, hidden_size),
                                 jnp.float32, -scale_h, scale_h),
        "b1": jax.random.uniform(ks[3], (num_tasks, hidden_size), jnp.float32,
                                 -scale_h, scale_h),
        "w2": jax.random.uniform(ks[4], (num_tasks, hidden_size, 1),
                                 jnp.float32, -scale_h, scale_h),
        "b2": jax.random.uniform(ks[5], (num_tasks, 1), jnp.float32,
                                 -scale_h, scale_h),
        # log_sigma is a model parameter but is NOT used in forward().
        "log_sigma": jnp.zeros((num_tasks,), jnp.float32),
    }


def reference_forward(x, params):
    """Pure-JAX reference matching the PyTorch module semantics."""
    s = jnp.maximum(x @ params["w0"] + params["b0"], 0.0)
    outs = []
    for t in range(params["w1"].shape[0]):
        h = jnp.maximum(s @ params["w1"][t] + params["b1"][t][None, :], 0.0)
        outs.append(h @ params["w2"][t] + params["b2"][t][None, :])
    return outs


if __name__ == "__main__":
    B, INPUT, HIDDEN, TASKS = 2, 16, 32, 4
    key = jax.random.PRNGKey(0)
    kx, kp = jax.random.split(key)
    x = jax.random.normal(kx, (B, INPUT), jnp.float32)
    params = init_params(kp, INPUT, HIDDEN, TASKS)

    # Fusion done ONCE, off the per-call path.  (Use weight_dtype=jnp.bfloat16
    # at production sizes; that breaks the 1e-5 toy tolerance below.)
    fused = prepare_fused_params(params, weight_dtype=jnp.float32)

    out = separate_mtl_forward(x, fused)
    out = jax.block_until_ready(out)
    assert out.shape == (B, TASKS)

    refs = reference_forward(x, params)
    for t in range(TASKS):
        assert jnp.allclose(out[:, t:t + 1], refs[t], atol=1e-5, rtol=1e-5)

    # PyTorch-parity list form (off the hot path), just to check shapes.
    outs_list = outputs_as_list(out)
    assert len(outs_list) == TASKS and all(o.shape == (B, 1) for o in outs_list)

    print("KERNEL_OK")
</pallas_src>

<mosaic_0001>
module attributes {stable_mosaic.version = 11 : i64} {
  func.func @_mtl_kernel(%arg0: i32, %arg1: memref<2x16xf32, #tpu.memory_space<vmem>>, %arg2: memref<16x32xf32, #tpu.memory_space<vmem>>, %arg3: memref<1x32xf32, #tpu.memory_space<vmem>>, %arg4: memref<32x128xf32, #tpu.memory_space<vmem>>, %arg5: memref<1x128xf32, #tpu.memory_space<vmem>>, %arg6: memref<1x128xf32, #tpu.memory_space<vmem>>, %arg7: memref<1x4xf32, #tpu.memory_space<vmem>>, %arg8: memref<2x4xf32, #tpu.memory_space<vmem>>) attributes {dimension_semantics = [#tpu.dimension_semantics<parallel>], iteration_bounds = array<i64: 1>, scalar_prefetch = 0 : i64, scratch_operands = 0 : i64, tpu.core_type = #tpu.core_type<tc>, window_params = [{transform_indices = @transform_0, window_bounds = array<i64: 2, 16>}, {pipeline_mode = #tpu.pipeline_mode<synchronous>, transform_indices = @transform_1, window_bounds = array<i64: 16, 32>}, {pipeline_mode = #tpu.pipeline_mode<synchronous>, transform_indices = @transform_2, window_bounds = array<i64: 1, 32>}, {pipeline_mode = #tpu.pipeline_mode<synchronous>, transform_indices = @transform_3, window_bounds = array<i64: 32, 128>}, {pipeline_mode = #tpu.pipeline_mode<synchronous>, transform_indices = @transform_4, window_bounds = array<i64: 1, 128>}, {pipeline_mode = #tpu.pipeline_mode<synchronous>, transform_indices = @transform_5, window_bounds = array<i64: 1, 128>}, {pipeline_mode = #tpu.pipeline_mode<synchronous>, transform_indices = @transform_6, window_bounds = array<i64: 1, 4>}, {transform_indices = @transform_7, window_bounds = array<i64: 2, 4>}]} {
    %c0 = arith.constant 0 : index
    %c0_0 = arith.constant 0 : index
    %0 = vector.load %arg1[%c0, %c0_0] : memref<2x16xf32, #tpu.memory_space<vmem>>, vector<2x16xf32>
    %c0_1 = arith.constant 0 : index
    %c0_2 = arith.constant 0 : index
    %1 = vector.load %arg2[%c0_1, %c0_2] : memref<16x32xf32, #tpu.memory_space<vmem>>, vector<16x32xf32>
    %cst = arith.constant dense<0.000000e+00> : vector<2x32xf32>
    %2 = tpu.matmul %0, %1, %cst {dimension_numbers = #tpu.dot_dimension_numbers<[1], [0], [0], [1], [0, 0, 1, 1], [], []>} : vector<2x16xf32>, vector<16x32xf32>, vector<2x32xf32> -> vector<2x32xf32>
    %c0_3 = arith.constant 0 : index
    %c0_4 = arith.constant 0 : index
    %3 = vector.load %arg3[%c0_3, %c0_4] : memref<1x32xf32, #tpu.memory_space<vmem>>, vector<1x32xf32>
    %4 = vector.broadcast %3 : vector<1x32xf32> to vector<2x32xf32>
    %5 = arith.addf %2, %4 : vector<2x32xf32>
    %cst_5 = arith.constant 0.000000e+00 : f32
    %6 = vector.broadcast %cst_5 : f32 to vector<2x32xf32>
    %7 = arith.maximumf %5, %6 : vector<2x32xf32>
    %c0_6 = arith.constant 0 : index
    %c0_7 = arith.constant 0 : index
    %8 = vector.load %arg4[%c0_6, %c0_7] : memref<32x128xf32, #tpu.memory_space<vmem>>, vector<32x128xf32>
    %cst_8 = arith.constant dense<0.000000e+00> : vector<2x128xf32>
    %9 = tpu.matmul %7, %8, %cst_8 {dimension_numbers = #tpu.dot_dimension_numbers<[1], [0], [0], [1], [0, 0, 1, 1], [], []>} : vector<2x32xf32>, vector<32x128xf32>, vector<2x128xf32> -> vector<2x128xf32>
    %c0_9 = arith.constant 0 : index
    %c0_10 = arith.constant 0 : index
    %10 = vector.load %arg5[%c0_9, %c0_10] : memref<1x128xf32, #tpu.memory_space<vmem>>, vector<1x128xf32>
    %11 = vector.broadcast %10 : vector<1x128xf32> to vector<2x128xf32>
    %12 = arith.addf %9, %11 : vector<2x128xf32>
    %cst_11 = arith.constant 0.000000e+00 : f32
    %13 = vector.broadcast %cst_11 : f32 to vector<2x128xf32>
    %14 = arith.maximumf %12, %13 : vector<2x128xf32>
    %c0_12 = arith.constant 0 : index
    %c0_13 = arith.constant 0 : index
    %15 = vector.load %arg6[%c0_12, %c0_13] : memref<1x128xf32, #tpu.memory_space<vmem>>, vector<1x128xf32>
    %16 = vector.broadcast %15 : vector<1x128xf32> to vector<2x128xf32>
    %17 = arith.mulf %14, %16 : vector<2x128xf32>
    %18 = tpu.iota {dimensions = array<i32: 1>} : vector<2x4xi32>
    %c0_14 = arith.constant 0 : index
    %c0_15 = arith.constant 0 : index
    %19 = vector.load %arg7[%c0_14, %c0_15] : memref<1x4xf32, #tpu.memory_space<vmem>>, vector<1x4xf32>
    %cst_16 = arith.constant 0.000000e+00 : f32
    %20 = vector.broadcast %cst_16 : f32 to vector<2x4xf32>
    %21 = vector.broadcast %19 : vector<1x4xf32> to vector<2x4xf32>
    %22 = arith.addf %21, %20 : vector<2x4xf32>
    %23 = vector.extract_strided_slice %17 {offsets = [0, 0], sizes = [2, 32], strides = [1, 1]} : vector<2x128xf32> to vector<2x32xf32>
    %cst_17 = arith.constant dense<0.000000e+00> : vector<2xf32>
    %24 = vector.multi_reduction <add>, %23, %cst_17 [1] : vector<2x32xf32> to vector<2xf32>
    %25 = vector.shape_cast %24 : vector<2xf32> to vector<2x1xf32>
    %c0_i32 = arith.constant 0 : i32
    %26 = vector.broadcast %c0_i32 : i32 to vector<2x4xi32>
    %27 = arith.cmpi eq, %18, %26 : vector<2x4xi32>
    %cst_18 = arith.constant 0.000000e+00 : f32
    %28 = vector.shape_cast %25 : vector<2x1xf32> to vector<2x1xf32>
    %29 = vector.broadcast %28 : vector<2x1xf32> to vector<2x4xf32>
    %30 = vector.broadcast %cst_18 : f32 to vector<2x4xf32>
    %31 = arith.select %27, %29, %30 : vector<2x4xi1>, vector<2x4xf32>
    %32 = arith.addf %22, %31 : vector<2x4xf32>
    %33 = vector.extract_strided_slice %17 {offsets = [0, 32], sizes = [2, 32], strides = [1, 1]} : vector<2x128xf32> to vector<2x32xf32>
    %cst_19 = arith.constant dense<0.000000e+00> : vector<2xf32>
    %34 = vector.multi_reduction <add>, %33, %cst_19 [1] : vector<2x32xf32> to vector<2xf32>
    %35 = vector.shape_cast %34 : vector<2xf32> to vector<2x1xf32>
    %c1_i32 = arith.constant 1 : i32
    %36 = vector.broadcast %c1_i32 : i32 to vector<2x4xi32>
    %37 = arith.cmpi eq, %18, %36 : vector<2x4xi32>
    %cst_20 = arith.constant 0.000000e+00 : f32
    %38 = vector.shape_cast %35 : vector<2x1xf32> to vector<2x1xf32>
    %39 = vector.broadcast %38 : vector<2x1xf32> to vector<2x4xf32>
    %40 = vector.broadcast %cst_20 : f32 to vector<2x4xf32>
    %41 = arith.select %37, %39, %40 : vector<2x4xi1>, vector<2x4xf32>
    %42 = arith.addf %32, %41 : vector<2x4xf32>
    %43 = vector.extract_strided_slice %17 {offsets = [0, 64], sizes = [2, 32], strides = [1, 1]} : vector<2x128xf32> to vector<2x32xf32>
    %cst_21 = arith.constant dense<0.000000e+00> : vector<2xf32>
    %44 = vector.multi_reduction <add>, %43, %cst_21 [1] : vector<2x32xf32> to vector<2xf32>
    %45 = vector.shape_cast %44 : vector<2xf32> to vector<2x1xf32>
    %c2_i32 = arith.constant 2 : i32
    %46 = vector.broadcast %c2_i32 : i32 to vector<2x4xi32>
    %47 = arith.cmpi eq, %18, %46 : vector<2x4xi32>
    %cst_22 = arith.constant 0.000000e+00 : f32
    %48 = vector.shape_cast %45 : vector<2x1xf32> to vector<2x1xf32>
    %49 = vector.broadcast %48 : vector<2x1xf32> to vector<2x4xf32>
    %50 = vector.broadcast %cst_22 : f32 to vector<2x4xf32>
    %51 = arith.select %47, %49, %50 : vector<2x4xi1>, vector<2x4xf32>
    %52 = arith.addf %42, %51 : vector<2x4xf32>
    %53 = vector.extract_strided_slice %17 {offsets = [0, 96], sizes = [2, 32], strides = [1, 1]} : vector<2x128xf32> to vector<2x32xf32>
    %cst_23 = arith.constant dense<0.000000e+00> : vector<2xf32>
    %54 = vector.multi_reduction <add>, %53, %cst_23 [1] : vector<2x32xf32> to vector<2xf32>
    %55 = vector.shape_cast %54 : vector<2xf32> to vector<2x1xf32>
    %c3_i32 = arith.constant 3 : i32
    %56 = vector.broadcast %c3_i32 : i32 to vector<2x4xi32>
    %57 = arith.cmpi eq, %18, %56 : vector<2x4xi32>
    %cst_24 = arith.constant 0.000000e+00 : f32
    %58 = vector.shape_cast %55 : vector<2x1xf32> to vector<2x1xf32>
    %59 = vector.broadcast %58 : vector<2x1xf32> to vector<2x4xf32>
    %60 = vector.broadcast %cst_24 : f32 to vector<2x4xf32>
    %61 = arith.select %57, %59, %60 : vector<2x4xi1>, vector<2x4xf32>
    %62 = arith.addf %52, %61 : vector<2x4xf32>
    %c0_25 = arith.constant 0 : index
    %c0_26 = arith.constant 0 : index
    %63 = vector.load %arg8[%c0_25, %c0_26] : memref<2x4xf32, #tpu.memory_space<vmem>>, vector<2x4xf32>
    tpu.vector_store %arg8[%c0_25, %c0_26], %62 {strides = array<i32>} : memref<2x4xf32, #tpu.memory_space<vmem>>, vector<2x4xf32>,
    return
  }
  func.func @transform_0(%arg0: i32) -> (i32, i32) {
    %c0_i32 = arith.constant 0 : i32
    %c0_i32_0 = arith.constant 0 : i32
    return %arg0, %c0_i32 : i32, i32
  }
  func.func @transform_1(%arg0: i32) -> (i32, i32) {
    %c0_i32 = arith.constant 0 : i32
    %c0_i32_0 = arith.constant 0 : i32
    %c0_i32_1 = arith.constant 0 : i32
    return %c0_i32, %c0_i32_0 : i32, i32
  }
  func.func @transform_2(%arg0: i32) -> (i32, i32) {
    %c0_i32 = arith.constant 0 : i32
    %c0_i32_0 = arith.constant 0 : i32
    %c0_i32_1 = arith.constant 0 : i32
    return %c0_i32, %c0_i32_0 : i32, i32
  }
  func.func @transform_3(%arg0: i32) -> (i32, i32) {
    %c0_i32 = arith.constant 0 : i32
    %c0_i32_0 = arith.constant 0 : i32
    %c0_i32_1 = arith.constant 0 : i32
    return %c0_i32, %c0_i32_0 : i32, i32
  }
  func.func @transform_4(%arg0: i32) -> (i32, i32) {
    %c0_i32 = arith.constant 0 : i32
    %c0_i32_0 = arith.constant 0 : i32
    %c0_i32_1 = arith.constant 0 : i32
    return %c0_i32, %c0_i32_0 : i32, i32
  }
  func.func @transform_5(%arg0: i32) -> (i32, i32) {
    %c0_i32 = arith.constant 0 : i32
    %c0_i32_0 = arith.constant 0 : i32
    %c0_i32_1 = arith.constant 0 : i32
    return %c0_i32, %c0_i32_0 : i32, i32
  }
  func.func @transform_6(%arg0: i32) -> (i32, i32) {
    %c0_i32 = arith.constant 0 : i32
    %c0_i32_0 = arith.constant 0 : i32
    %c0_i32_1 = arith.constant 0 : i32
    return %c0_i32, %c0_i32_0 : i32, i32
  }
  func.func @transform_7(%arg0: i32) -> (i32, i32) {
    %c0_i32 = arith.constant 0 : i32
    %c0_i32_0 = arith.constant 0 : i32
    return %arg0, %c0_i32 : i32, i32
  }
}

</mosaic_0001>

<bundles_post_ra>
// kernel: tpu_custom_call.1
= control target key start
LH: loop header
LB: loop body
LE: loop exit
PB: predicated region body
PF: predicated region fallthrough
CT: control target
= control target key end

     0   :  { %12 = vsyncpa [#allocation3], 0  ;;  %s394_s0 = inlined_call_operand.hbm [shape: f32[2,16], index: 0, kind: input, shape index: {}]   ;;  %s395_s1 = inlined_call_operand.hbm [shape: f32[16,32], index: 1, kind: input, shape index: {}]   ;;  %s396_s2 = inlined_call_operand.vmem [shape: f32[1,32], index: 2, kind: input, shape index: {}]   ;;  %s397_s3 = inlined_call_operand.hbm [shape: f32[32,128], index: 3, kind: input, shape index: {}]   ;;  %s398_s4 = inlined_call_operand.vmem [shape: f32[1,128], index: 4, kind: input, shape index: {}]   ;;  %s399_s5 = inlined_call_operand.vmem [shape: f32[1,128], index: 5, kind: input, shape index: {}]   ;;  %s400_s6 = inlined_call_operand.vmem [shape: f32[1,4], index: 6, kind: input, shape index: {}]   ;;  %s401_s7 = inlined_call_operand.hbm [shape: f32[2,4], index: 7, kind: output, shape index: {}]  }
   0x1   :  { %13 = vsyncpa [#allocation6], 0  ;;  %s30_s26 = sshll.u32 %s395_s1, 4  ;;  %s31_s26 = int_to_ptr.hbm [resolvable:$true] %s30_s26 }
   0x2   :  { %14 = vsyncpa [#allocation4], 0  ;;  %s321_s27 = smov [#allocation5]   ;;  %s20_s8 = sshll.u32 %s394_s0, 4  ;;  %s21_s8 = int_to_ptr.hbm [resolvable:$true] %s20_s8 }
   0x3   :  { %s32_s28 = sshll.u32 %s321_s27, 4  ;;  %s322_s9 = smov 128   ;;  %s33_s28 = int_to_ptr.vmem [resolvable:$true] %s32_s28 }
   0x4   :  { %s323_s10 = smov 8   ;;  %s324_s11 = smov [#allocation2]  }
   0x5   :  { %38 = dma.hbm_to_vmem [thread:$0]  %s31_s26, 256, %s33_s28, [#allocation6], %s322_s9, %s322_s9, %s323_s10  }
   0x6   :  { %s22_s12 = sshll.u32 %s324_s11, 4  ;;  %s45_s15 = sshll.u32 %s397_s3, 4  ;;  %s23_s12 = int_to_ptr.vmem [resolvable:$true] %s22_s12  ;;  %s46_s15 = int_to_ptr.hbm [resolvable:$true] %s45_s15 }
   0x7   :  { %25 = dma.hbm_to_vmem [thread:$0]  %s21_s8, 32, %s23_s12, [#allocation3]  }
   0x8   :  { %s325_s1 = smov [#allocation7]  }
   0x9   :  { %s47_s16 = sshll.u32 %s325_s1, 4  ;;  %s48_s16 = int_to_ptr.vmem [resolvable:$true] %s47_s16 }
   0xa   :  { %53 = dma.hbm_to_vmem [thread:$0]  %s46_s15, 512, %s48_s16, [#allocation6], %s322_s9, %s322_s9, %s323_s10  }
   0xb   :  { %315 = dma.done.wait [#allocation3], 32  }
   0xc   :  { %316 = vsyncadd [#allocation3], 4294967264 }
   0xd   :  { %317 = dma.done.wait [#allocation6], 768  }
   0xe   :  { %318 = vsyncadd [#allocation6], 4294966528  ;;  %v74_v0 = vld [vmem:[#allocation5 + $0x8] sm:$0xff]  ;;  %v73_v1 = vld [vmem:[#allocation5] sm:$0xff]  ;;  %vm79_vm0 = vcmask 130048   ;;  %vm112_vm1 = vcmask 261120   ;;  %v142_v24 = vlaneseq }
   0xf   :  { %97 = vmatpush.msra.mxu0 %v74_v0  ;;  %v72_v2 = vld [vmem:[#allocation2] sm:$0x3]  ;;  %v107_v3 = vld [vmem:[#allocation7 + $0x18] sm:$0xff]  ;;  %v106_v4 = vld [vmem:[#allocation7 + $0x10] sm:$0xff]  ;;  %s326_s21 = smov 32   ;;  %s328_s22 = smov 64  }
  0x10   :  { %128 = vmatpush.msra.mxu1 %v107_v3  ;;  %v105_v5 = vld [vmem:[#allocation7 + $0x8] sm:$0xff]  ;;  %v104_v6 = vld [vmem:[#allocation7] sm:$0xff]  ;;  %vm149_vm2 = vcmask 254976   ;;  %v143_v25 = vand.u32 127, %v142_v24  ;;  %s329_s23 = smov [#allocation8]   ;;  %s193_s27 = sshll.u32 %s401_s7, 4  ;;  %s194_s27 = int_to_ptr.hbm [resolvable:$true] %s193_s27 }
  0x11   :  { %98 = vmatpush.msra.mxu0 %v73_v1  ;;  %v215_v7 = vld [vmem:[%s396_s2] ss:$0 sm:$0xff]  ;;  %s327_s2 = smov 96   ;;  %s191_s24 = sshll.u32 %s329_s23, 4  ;;  %vm184_vm7 = vcmask 25600   ;;  %s192_s24 = int_to_ptr.vmem [resolvable:$true] %s191_s24 }
  0x12   :  { %204 = vmatmul.msk.f32.vlgmr.msra.gmra.mxu0 %vm79_vm0, %v72_v2  ;;  %129 = vmatpush.msra.mxu1 %v106_v4  ;;  %v216_v11 = vld [vmem:[%s398_s4] ss:$0 sm:$0xff]  ;;  %vm153_vm3 = vcmp.eq.s32.totalorder %v143_v25, 0  ;;  %vm163_vm4 = vcmp.eq.s32.totalorder %v143_v25, 1  ;;  %vm172_vm5 = vcmp.eq.s32.totalorder %v143_v25, 2  ;;  %vm181_vm6 = vcmp.eq.s32.totalorder %v143_v25, 3 }
  0x13   :  { %v217_v14 = vld [vmem:[%s399_s5] ss:$0 sm:$0xff] }
  0x14   :  { %130 = vmatpush.msra.mxu1 %v105_v5  ;;  %v218_v28 = vld [vmem:[%s400_s6] ss:$0 sm:$0xff] }
  0x16   :  { %131 = vmatpush.msra.mxu1 %v104_v6 }
  0x8f   :  { %v100_v8 = vpop.f32.mrf.mxu0 }
  0x90   :  { %v101_v9 = vadd.f32 %v215_v7, %v100_v8 }
  0x92   :  { %v103_v10 = vmax.f32 %v101_v9, 0.0 }
  0x94   :  { %205 = vmatmul.msk.f32.vlgmr.msra.gmra.mxu1 %vm112_vm1, %v103_v10 }
 0x111   :  { %v133_v12 = vpop.f32.mrf.mxu1 }
 0x112   :  { %v134_v13 = vadd.f32 %v216_v11, %v133_v12 }
 0x114   :  { %v136_v15 = vmax.f32 %v134_v13, 0.0 }
 0x116   :  { %v141_v16 = vmul.f32 %v217_v14, %v136_v15 }
 0x118   :  { %175 = vrot.lane.b32.xlu1 %v141_v16, %s326_s21  ;;  %157 = vrot.lane.b32.xlu0 %v141_v16, %s327_s2  ;;  %v150_v17 = vsel %vm149_vm2, %v141_v16, 0.0 }
 0x120   :  { %166 = vrot.lane.b32.xlu0 %v141_v16, %s328_s22 }
 0x142   :  { %151 = vadd.xlane.f32.xlu1 %v150_v17 }
 0x18a   :  { %v176_v18 = vpop.permute.xlu1 %175  ;;  %v158_v19 = vpop.permute.xlu0 %157 }
 0x18b   :  { %v178_v20 = vsel %vm149_vm2, %v176_v18, 0.0  ;;  %v160_v21 = vsel %vm149_vm2, %v158_v19, 0.0 }
 0x18c   :  { %179 = vadd.xlane.f32.xlu0 %v178_v20  ;;  %161 = vadd.xlane.f32.xlu2 %v160_v21 }
 0x192   :  { %v167_v22 = vpop.permute.xlu0 %166 }
 0x193   :  { %v169_v23 = vsel %vm149_vm2, %v167_v22, 0.0 }
 0x194   :  { %170 = vadd.xlane.f32.xlu2 %v169_v23 }
 0x1b5   :  { %v152_v26 = vpop.xlane.xlu1 %151 }
 0x1b6   :  { %v154_v29 = vsel %vm153_vm3, %v152_v26, 0.0 }
 0x1b7   :  { %v155_v31 = vadd.f32 %v218_v28, %v154_v29 }
 0x1ff   :  { %v162_v27 = vpop.xlane.xlu2 %161  ;;  %v180_v33 = vpop.xlane.xlu0 %179 }
 0x200   :  { %v164_v30 = vsel %vm163_vm4, %v162_v27, 0.0  ;;  %v182_v37 = vsel %vm181_vm6, %v180_v33, 0.0 }
 0x201   :  { %v165_v32 = vadd.f32 %v164_v30, %v155_v31 }
 0x207   :  { %v171_v34 = vpop.xlane.xlu2 %170 }
 0x208   :  { %v173_v35 = vsel %vm172_vm5, %v171_v34, 0.0 }
 0x209   :  { %v174_v36 = vadd.f32 %v173_v35, %v165_v32 }
 0x20b   :  { %v183_v38 = vadd.f32 %v182_v37, %v174_v36 }
 0x20d   :  { %185 = vst.msk [vmem:[#allocation8] sm:$0x3] %vm184_vm7, %v183_v38 }
 0x20e   :  { %196 = dma.vmem_to_hbm [thread:$0]  %s192_s24, 32, %s194_s27, [#allocation4]  }
 0x20f   :  { %319 = dma.done.wait [#allocation4], 32  }
 0x210   :  { %320 = vsyncadd [#allocation4], 4294967264 }
 0x211   :  { %201 = vsyncpa [#allocation3], 1 }
 0x212   :  { %202 = vsyncpa [#allocation6], 1 }
 0x213   :  { %203 = vsyncpa [#allocation4], 1 }

</bundles_post_ra>
